<compile_context>
chip_gen: v7x
topology: tpu7x:2x2x1
jax: 0.10.0
libtpu: 0.0.40
codegen_flags: <defaults>
</compile_context>

<pallas_src>
import functools

import jax
import jax.numpy as jnp
from jax import lax
from jax.experimental import pallas as pl
from jax.experimental.pallas import tpu as pltpu

ALPHA = 0.5
DELTA = 3.0 / (1.0 - ALPHA)   # = 6.0
ETA = 1.0
MS_ITER = 3


def _round_up(x, m):
    return (x + m - 1) // m * m


def _pick_col_tile(n_pad, max_tile):
    """Largest multiple of 128 that divides n_pad and is <= max_tile."""
    best = 128
    t = 256
    while t <= min(max_tile, n_pad):
        if n_pad % t == 0:
            best = t
        t += 128
    return best


# ----------------------------------------------------------------------------
# Fused mean-shift kernel: all ms_iter steps, column-tiled K, one invocation.
# ----------------------------------------------------------------------------
def _mean_shift_kernel(x_ref, o_ref, xs_ref, *, delta, eta, ms_iter,
                       n_valid, tn, mm_dtype):
    # x_ref : [D_pad, N_pad] f32 (padded columns are exactly zero)
    # o_ref : [ms_iter, D_pad, N_pad] f32
    # xs_ref: [D_pad, N_pad] mm_dtype scratch, holds delta * X for the step
    d_pad, n_pad = x_ref.shape
    n_tiles = n_pad // tn
    n_pad_rows = n_pad - n_valid          # zero-padded columns of X
    inv_delta = 1.0 / delta
    dn = (((0,), (0,)), ((), ()))         # contract feature dim of both operands

    def tile_step(cur_ref, out_ref, off):
        xs = xs_ref[...]                                        # [D, Np], delta*X
        rhs = cur_ref[:, pl.ds(off, tn)].astype(mm_dtype)       # [D, tn]
        # S_j = delta * X^T X[:, tile]   (delta folded into the LHS)
        s = lax.dot_general(xs, rhs, dn,
                            preferred_element_type=jnp.float32)  # [Np, tn]
        k = jnp.exp(s)                                           # [Np, tn]
        # column sums of K (VPU/XLU reduce, NOT a K^T @ ones matmul);
        # zero-padded columns of X contribute exp(0)=1 per padded row.
        d = jnp.sum(k, axis=0, keepdims=True)                    # [1, tn]
        if n_pad_rows:
            d = d - jnp.float32(n_pad_rows)
        r = pl.reciprocal(d, approx=True)                        # EUP
        r = r * (2.0 - d * r)                                    # Newton step -> ~exact 1/d
        q = r * jnp.float32(inv_delta)                           # undo delta in LHS of X@K
        # X @ K_j computed as (delta*X) @ K_j, rescaled via q
        xk = jnp.dot(xs, k.astype(mm_dtype),
                     preferred_element_type=jnp.float32)         # [D, tn]
        xn = xk * q                                              # column scaling == K @ diag(q)
        if eta != 1.0:                                           # identity term of P
            xn = (1.0 - eta) * cur_ref[:, pl.ds(off, tn)].astype(jnp.float32) + eta * xn
        if n_pad_rows:
            col = lax.broadcasted_iota(jnp.int32, (1, tn), 1) + off
            xn = jnp.where(col < n_valid, xn, 0.0)               # keep pad cols exactly zero
        out_ref[:, pl.ds(off, tn)] = xn.astype(out_ref.dtype)

    for it in range(ms_iter):                                    # static unroll (ms_iter = 3)
        cur_ref = x_ref if it == 0 else o_ref.at[it - 1]
        out_ref = o_ref.at[it]
        # delta * X, computed once per step (replaces an N^2 multiply per tile)
        xs_ref[...] = (cur_ref[...].astype(jnp.float32) *
                       jnp.float32(delta)).astype(mm_dtype)
        if n_tiles <= 8:
            for jt in range(n_tiles):                            # static offsets
                tile_step(cur_ref, out_ref, jt * tn)
        else:
            @pl.loop(0, n_tiles)
            def _(j):
                tile_step(cur_ref, out_ref, pl.multiple_of(j * tn, tn))


def mean_shift_cluster(x, delta=DELTA, eta=ETA, ms_iter=MS_ITER, *,
                       col_tile=512, mm_dtype=jnp.float32):
    """x: [D, N] array. Returns list of ms_iter cluster embeddings, each [D, N].

    mm_dtype=jnp.bfloat16 enables the fast MXU path on v6e/v7x (and halves the
    scratch footprint) but exp(delta*S) amplifies bf16 rounding ~delta x, so
    validate against the f32 reference before using it.
    """
    x = jnp.asarray(x, jnp.float32)
    d_feat, n = x.shape
    n_pad = _round_up(max(n, 1), 128)     # lane-dense sample axis
    d_pad = _round_up(max(d_feat, 1), 8)  # sublane-aligned feature axis
    tn = _pick_col_tile(n_pad, col_tile)
    x_p = jnp.zeros((d_pad, n_pad), jnp.float32).at[:d_feat, :n].set(x)

    itemsize = jnp.dtype(mm_dtype).itemsize
    vmem_needed = (
        4 * (int(ms_iter) + 1) * d_pad * n_pad        # padded input + stacked outputs
        + itemsize * d_pad * n_pad                    # delta*X scratch
        + 4 * (2 * n_pad * tn + 2 * d_pad * tn)       # per-tile S/K and X@K temporaries
        + (4 << 20))                                  # headroom
    vmem_limit = int(min(max(vmem_needed, 32 << 20), 64 << 20))

    out = pl.pallas_call(
        functools.partial(
            _mean_shift_kernel,
            delta=float(delta), eta=float(eta), ms_iter=int(ms_iter),
            n_valid=int(n), tn=int(tn), mm_dtype=mm_dtype),
        out_shape=jax.ShapeDtypeStruct((int(ms_iter), d_pad, n_pad), jnp.float32),
        in_specs=[pl.BlockSpec(memory_space=pltpu.MemorySpace.VMEM)],
        out_specs=pl.BlockSpec(memory_space=pltpu.MemorySpace.VMEM),
        scratch_shapes=[pltpu.VMEM((d_pad, n_pad), mm_dtype)],
        compiler_params=pltpu.CompilerParams(vmem_limit_bytes=vmem_limit),
    )(x_p)
    return [out[i, :d_feat, :n] for i in range(int(ms_iter))]


# ----------------------------------------------------------------------------
# Pure-JAX reference that mirrors the torch module op-for-op
# (eye / diagflat / ones-matmul included) for validation.
# ----------------------------------------------------------------------------
def _ref_mean_shift_once(x, delta, eta):
    hi = jax.lax.Precision.HIGHEST
    s = jnp.matmul(x.T, x, precision=hi)
    k = jnp.exp(delta * s)
    n = x.shape[1]
    d = jnp.matmul(k.T, jnp.ones((n, 1), jnp.float32), precision=hi)
    q = 1.0 / d
    d_inv = jnp.diagflat(q)
    eye = jnp.eye(n, dtype=jnp.float32)
    p = (1.0 - eta) * eye + eta * jnp.matmul(k, d_inv, precision=hi)
    return jnp.matmul(x, p, precision=hi)


def _ref_forward(x, delta, eta, ms_iter):
    outs = [None] * ms_iter
    outs[0] = _ref_mean_shift_once(x, delta, eta)
    for it in range(1, ms_iter):
        outs[it] = _ref_mean_shift_once(outs[it - 1], delta, eta)
    return outs


if __name__ == "__main__":
    key = jax.random.PRNGKey(0)

    D, N = 32, 8                                   # features x samples, like the module
    x = jax.random.normal(key, (D, N), jnp.float32)
    # unit-norm columns so exp(delta * x_i.x_j) stays finite (delta = 6),
    # same assumption as the torch module's callers.
    x = x / jnp.linalg.norm(x, axis=0, keepdims=True)

    clust_embs = mean_shift_cluster(x, DELTA, ETA, MS_ITER)
    jax.block_until_ready(clust_embs)

    refs = _ref_forward(x, DELTA, ETA, MS_ITER)
    for got, ref in zip(clust_embs, refs):
        assert got.shape == ref.shape, (got.shape, ref.shape)
        assert jnp.allclose(got, ref, rtol=2e-3, atol=2e-3), (
            float(jnp.max(jnp.abs(got - ref))))

    print("KERNEL_OK")
</pallas_src>

<mosaic_0001>
module attributes {stable_mosaic.version = 11 : i64} {
  func.func @_mean_shift_kernel(%arg0: memref<32x128xf32, #tpu.memory_space<vmem>>, %arg1: memref<3x32x128xf32, #tpu.memory_space<vmem>>, %arg2: memref<32x128xf32, #tpu.memory_space<vmem>>) attributes {dimension_semantics = [], scalar_prefetch = 0 : i64, scratch_operands = 1 : i64, tpu.core_type = #tpu.core_type<tc>} {
    %c0 = arith.constant 0 : index
    %c0_0 = arith.constant 0 : index
    %0 = vector.load %arg0[%c0, %c0_0] : memref<32x128xf32, #tpu.memory_space<vmem>>, vector<32x128xf32>
    %cst = arith.constant 6.000000e+00 : f32
    %1 = vector.broadcast %cst : f32 to vector<32x128xf32>
    %2 = arith.mulf %0, %1 : vector<32x128xf32>
    %c0_1 = arith.constant 0 : index
    %c0_2 = arith.constant 0 : index
    %3 = vector.load %arg2[%c0_1, %c0_2] : memref<32x128xf32, #tpu.memory_space<vmem>>, vector<32x128xf32>
    tpu.vector_store %arg2[%c0_1, %c0_2], %2 {strides = array<i32>} : memref<32x128xf32, #tpu.memory_space<vmem>>, vector<32x128xf32>,
    %c0_3 = arith.constant 0 : index
    %c0_4 = arith.constant 0 : index
    %4 = vector.load %arg2[%c0_3, %c0_4] : memref<32x128xf32, #tpu.memory_space<vmem>>, vector<32x128xf32>
    %c0_5 = arith.constant 0 : index
    %c0_6 = arith.constant 0 : index
    %5 = vector.load %arg0[%c0_5, %c0_6] : memref<32x128xf32, #tpu.memory_space<vmem>>, vector<32x128xf32>
    %cst_7 = arith.constant dense<0.000000e+00> : vector<128x128xf32>
    %6 = tpu.matmul %4, %5, %cst_7 {dimension_numbers = #tpu.dot_dimension_numbers<[0], [0], [1], [1], [0, 1, 1, 1], [], []>} : vector<32x128xf32>, vector<32x128xf32>, vector<128x128xf32> -> vector<128x128xf32>
    %7 = math.exp %6 : vector<128x128xf32>
    %cst_8 = arith.constant dense<0.000000e+00> : vector<128xf32>
    %8 = vector.multi_reduction <add>, %7, %cst_8 [0] : vector<128x128xf32> to vector<128xf32>
    %9 = vector.shape_cast %8 : vector<128xf32> to vector<1x128xf32>
    %cst_9 = arith.constant 1.200000e+02 : f32
    %10 = vector.broadcast %cst_9 : f32 to vector<1x128xf32>
    %11 = arith.subf %9, %10 : vector<1x128xf32>
    %12 = tpu.reciprocal %11 {approx = true} : vector<1x128xf32> -> vector<1x128xf32>
    %13 = arith.mulf %11, %12 : vector<1x128xf32>
    %cst_10 = arith.constant 2.000000e+00 : f32
    %14 = vector.broadcast %cst_10 : f32 to vector<1x128xf32>
    %15 = arith.subf %14, %13 : vector<1x128xf32>
    %16 = arith.mulf %12, %15 : vector<1x128xf32>
    %cst_11 = arith.constant 0.166666672 : f32
    %17 = vector.broadcast %cst_11 : f32 to vector<1x128xf32>
    %18 = arith.mulf %16, %17 : vector<1x128xf32>
    %cst_12 = arith.constant dense<0.000000e+00> : vector<32x128xf32>
    %19 = tpu.matmul %4, %7, %cst_12 {dimension_numbers = #tpu.dot_dimension_numbers<[1], [0], [0], [1], [0, 0, 1, 1], [], []>} : vector<32x128xf32>, vector<128x128xf32>, vector<32x128xf32> -> vector<32x128xf32>
    %20 = vector.broadcast %18 : vector<1x128xf32> to vector<32x128xf32>
    %21 = arith.mulf %19, %20 : vector<32x128xf32>
    %22 = tpu.iota {dimensions = array<i32: 1>} : vector<1x128xi32>
    %c0_i32 = arith.constant 0 : i32
    %23 = vector.broadcast %c0_i32 : i32 to vector<1x128xi32>
    %24 = arith.addi %22, %23 : vector<1x128xi32>
    %c8_i32 = arith.constant 8 : i32
    %25 = vector.broadcast %c8_i32 : i32 to vector<1x128xi32>
    %26 = arith.cmpi slt, %24, %25 : vector<1x128xi32>
    %cst_13 = arith.constant 0.000000e+00 : f32
    %27 = vector.shape_cast %26 : vector<1x128xi1> to vector<1x128xi1>
    %28 = vector.broadcast %27 : vector<1x128xi1> to vector<32x128xi1>
    %29 = vector.broadcast %cst_13 : f32 to vector<32x128xf32>
    %30 = arith.select %28, %21, %29 : vector<32x128xi1>, vector<32x128xf32>
    %c0_i32_14 = arith.constant 0 : i32
    %c0_i32_15 = arith.constant 0 : i32
    %c0_i32_16 = arith.constant 0 : i32
    %31 = tpu.memref_slice %arg1[%c0_i32_14, %c0_i32_15, %c0_i32_16] : memref<3x32x128xf32, #tpu.memory_space<vmem>> -> memref<1x32x128xf32, #tpu.memory_space<vmem>>
    %32 = tpu.memref_squeeze %31 : memref<1x32x128xf32, #tpu.memory_space<vmem>> -> memref<32x128xf32, #tpu.memory_space<vmem>>
    %c0_17 = arith.constant 0 : index
    %c0_18 = arith.constant 0 : index
    %33 = vector.load %32[%c0_17, %c0_18] : memref<32x128xf32, #tpu.memory_space<vmem>>, vector<32x128xf32>
    tpu.vector_store %32[%c0_17, %c0_18], %30 {strides = array<i32>} : memref<32x128xf32, #tpu.memory_space<vmem>>, vector<32x128xf32>,
    %c0_19 = arith.constant 0 : index
    %c0_20 = arith.constant 0 : index
    %c0_21 = arith.constant 0 : index
    %34 = vector.load %arg1[%c0_19, %c0_20, %c0_21] : memref<3x32x128xf32, #tpu.memory_space<vmem>>, vector<1x32x128xf32>
    %35 = vector.shape_cast %34 : vector<1x32x128xf32> to vector<32x128xf32>
    %cst_22 = arith.constant 6.000000e+00 : f32
    %36 = vector.broadcast %cst_22 : f32 to vector<32x128xf32>
    %37 = arith.mulf %35, %36 : vector<32x128xf32>
    %c0_23 = arith.constant 0 : index
    %c0_24 = arith.constant 0 : index
    %38 = vector.load %arg2[%c0_23, %c0_24] : memref<32x128xf32, #tpu.memory_space<vmem>>, vector<32x128xf32>
    tpu.vector_store %arg2[%c0_23, %c0_24], %37 {strides = array<i32>} : memref<32x128xf32, #tpu.memory_space<vmem>>, vector<32x128xf32>,
    %c0_25 = arith.constant 0 : index
    %c0_26 = arith.constant 0 : index
    %39 = vector.load %arg2[%c0_25, %c0_26] : memref<32x128xf32, #tpu.memory_space<vmem>>, vector<32x128xf32>
    %c0_i32_27 = arith.constant 0 : i32
    %c0_i32_28 = arith.constant 0 : i32
    %c0_i32_29 = arith.constant 0 : i32
    %40 = tpu.memref_slice %arg1[%c0_i32_27, %c0_i32_28, %c0_i32_29] : memref<3x32x128xf32, #tpu.memory_space<vmem>> -> memref<1x32x128xf32, #tpu.memory_space<vmem>>
    %41 = tpu.memref_squeeze %40 : memref<1x32x128xf32, #tpu.memory_space<vmem>> -> memref<32x128xf32, #tpu.memory_space<vmem>>
    %c0_30 = arith.constant 0 : index
    %c0_31 = arith.constant 0 : index
    %42 = vector.load %41[%c0_30, %c0_31] : memref<32x128xf32, #tpu.memory_space<vmem>>, vector<32x128xf32>
    %cst_32 = arith.constant dense<0.000000e+00> : vector<128x128xf32>
    %43 = tpu.matmul %39, %42, %cst_32 {dimension_numbers = #tpu.dot_dimension_numbers<[0], [0], [1], [1], [0, 1, 1, 1], [], []>} : vector<32x128xf32>, vector<32x128xf32>, vector<128x128xf32> -> vector<128x128xf32>
    %44 = math.exp %43 : vector<128x128xf32>
    %cst_33 = arith.constant dense<0.000000e+00> : vector<128xf32>
    %45 = vector.multi_reduction <add>, %44, %cst_33 [0] : vector<128x128xf32> to vector<128xf32>
    %46 = vector.shape_cast %45 : vector<128xf32> to vector<1x128xf32>
    %cst_34 = arith.constant 1.200000e+02 : f32
    %47 = vector.broadcast %cst_34 : f32 to vector<1x128xf32>
    %48 = arith.subf %46, %47 : vector<1x128xf32>
    %49 = tpu.reciprocal %48 {approx = true} : vector<1x128xf32> -> vector<1x128xf32>
    %50 = arith.mulf %48, %49 : vector<1x128xf32>
    %cst_35 = arith.constant 2.000000e+00 : f32
    %51 = vector.broadcast %cst_35 : f32 to vector<1x128xf32>
    %52 = arith.subf %51, %50 : vector<1x128xf32>
    %53 = arith.mulf %49, %52 : vector<1x128xf32>
    %cst_36 = arith.constant 0.166666672 : f32
    %54 = vector.broadcast %cst_36 : f32 to vector<1x128xf32>
    %55 = arith.mulf %53, %54 : vector<1x128xf32>
    %cst_37 = arith.constant dense<0.000000e+00> : vector<32x128xf32>
    %56 = tpu.matmul %39, %44, %cst_37 {dimension_numbers = #tpu.dot_dimension_numbers<[1], [0], [0], [1], [0, 0, 1, 1], [], []>} : vector<32x128xf32>, vector<128x128xf32>, vector<32x128xf32> -> vector<32x128xf32>
    %57 = vector.broadcast %55 : vector<1x128xf32> to vector<32x128xf32>
    %58 = arith.mulf %56, %57 : vector<32x128xf32>
    %59 = tpu.iota {dimensions = array<i32: 1>} : vector<1x128xi32>
    %c0_i32_38 = arith.constant 0 : i32
    %60 = vector.broadcast %c0_i32_38 : i32 to vector<1x128xi32>
    %61 = arith.addi %59, %60 : vector<1x128xi32>
    %c8_i32_39 = arith.constant 8 : i32
    %62 = vector.broadcast %c8_i32_39 : i32 to vector<1x128xi32>
    %63 = arith.cmpi slt, %61, %62 : vector<1x128xi32>
    %cst_40 = arith.constant 0.000000e+00 : f32
    %64 = vector.shape_cast %63 : vector<1x128xi1> to vector<1x128xi1>
    %65 = vector.broadcast %64 : vector<1x128xi1> to vector<32x128xi1>
    %66 = vector.broadcast %cst_40 : f32 to vector<32x128xf32>
    %67 = arith.select %65, %58, %66 : vector<32x128xi1>, vector<32x128xf32>
    %c1_i32 = arith.constant 1 : i32
    %c0_i32_41 = arith.constant 0 : i32
    %c0_i32_42 = arith.constant 0 : i32
    %68 = tpu.memref_slice %arg1[%c1_i32, %c0_i32_41, %c0_i32_42] : memref<3x32x128xf32, #tpu.memory_space<vmem>> -> memref<1x32x128xf32, #tpu.memory_space<vmem>>
    %69 = tpu.memref_squeeze %68 : memref<1x32x128xf32, #tpu.memory_space<vmem>> -> memref<32x128xf32, #tpu.memory_space<vmem>>
    %c0_43 = arith.constant 0 : index
    %c0_44 = arith.constant 0 : index
    %70 = vector.load %69[%c0_43, %c0_44] : memref<32x128xf32, #tpu.memory_space<vmem>>, vector<32x128xf32>
    tpu.vector_store %69[%c0_43, %c0_44], %67 {strides = array<i32>} : memref<32x128xf32, #tpu.memory_space<vmem>>, vector<32x128xf32>,
    %c1 = arith.constant 1 : index
    %c0_45 = arith.constant 0 : index
    %c0_46 = arith.constant 0 : index
    %71 = vector.load %arg1[%c1, %c0_45, %c0_46] : memref<3x32x128xf32, #tpu.memory_space<vmem>>, vector<1x32x128xf32>
    %72 = vector.shape_cast %71 : vector<1x32x128xf32> to vector<32x128xf32>
    %cst_47 = arith.constant 6.000000e+00 : f32
    %73 = vector.broadcast %cst_47 : f32 to vector<32x128xf32>
    %74 = arith.mulf %72, %73 : vector<32x128xf32>
    %c0_48 = arith.constant 0 : index
    %c0_49 = arith.constant 0 : index
    %75 = vector.load %arg2[%c0_48, %c0_49] : memref<32x128xf32, #tpu.memory_space<vmem>>, vector<32x128xf32>
    tpu.vector_store %arg2[%c0_48, %c0_49], %74 {strides = array<i32>} : memref<32x128xf32, #tpu.memory_space<vmem>>, vector<32x128xf32>,
    %c0_50 = arith.constant 0 : index
    %c0_51 = arith.constant 0 : index
    %76 = vector.load %arg2[%c0_50, %c0_51] : memref<32x128xf32, #tpu.memory_space<vmem>>, vector<32x128xf32>
    %c1_i32_52 = arith.constant 1 : i32
    %c0_i32_53 = arith.constant 0 : i32
    %c0_i32_54 = arith.constant 0 : i32
    %77 = tpu.memref_slice %arg1[%c1_i32_52, %c0_i32_53, %c0_i32_54] : memref<3x32x128xf32, #tpu.memory_space<vmem>> -> memref<1x32x128xf32, #tpu.memory_space<vmem>>
    %78 = tpu.memref_squeeze %77 : memref<1x32x128xf32, #tpu.memory_space<vmem>> -> memref<32x128xf32, #tpu.memory_space<vmem>>
    %c0_55 = arith.constant 0 : index
    %c0_56 = arith.constant 0 : index
    %79 = vector.load %78[%c0_55, %c0_56] : memref<32x128xf32, #tpu.memory_space<vmem>>, vector<32x128xf32>
    %cst_57 = arith.constant dense<0.000000e+00> : vector<128x128xf32>
    %80 = tpu.matmul %76, %79, %cst_57 {dimension_numbers = #tpu.dot_dimension_numbers<[0], [0], [1], [1], [0, 1, 1, 1], [], []>} : vector<32x128xf32>, vector<32x128xf32>, vector<128x128xf32> -> vector<128x128xf32>
    %81 = math.exp %80 : vector<128x128xf32>
    %cst_58 = arith.constant dense<0.000000e+00> : vector<128xf32>
    %82 = vector.multi_reduction <add>, %81, %cst_58 [0] : vector<128x128xf32> to vector<128xf32>
    %83 = vector.shape_cast %82 : vector<128xf32> to vector<1x128xf32>
    %cst_59 = arith.constant 1.200000e+02 : f32
    %84 = vector.broadcast %cst_59 : f32 to vector<1x128xf32>
    %85 = arith.subf %83, %84 : vector<1x128xf32>
    %86 = tpu.reciprocal %85 {approx = true} : vector<1x128xf32> -> vector<1x128xf32>
    %87 = arith.mulf %85, %86 : vector<1x128xf32>
    %cst_60 = arith.constant 2.000000e+00 : f32
    %88 = vector.broadcast %cst_60 : f32 to vector<1x128xf32>
    %89 = arith.subf %88, %87 : vector<1x128xf32>
    %90 = arith.mulf %86, %89 : vector<1x128xf32>
    %cst_61 = arith.constant 0.166666672 : f32
    %91 = vector.broadcast %cst_61 : f32 to vector<1x128xf32>
    %92 = arith.mulf %90, %91 : vector<1x128xf32>
    %cst_62 = arith.constant dense<0.000000e+00> : vector<32x128xf32>
    %93 = tpu.matmul %76, %81, %cst_62 {dimension_numbers = #tpu.dot_dimension_numbers<[1], [0], [0], [1], [0, 0, 1, 1], [], []>} : vector<32x128xf32>, vector<128x128xf32>, vector<32x128xf32> -> vector<32x128xf32>
    %94 = vector.broadcast %92 : vector<1x128xf32> to vector<32x128xf32>
    %95 = arith.mulf %93, %94 : vector<32x128xf32>
    %96 = tpu.iota {dimensions = array<i32: 1>} : vector<1x128xi32>
    %c0_i32_63 = arith.constant 0 : i32
    %97 = vector.broadcast %c0_i32_63 : i32 to vector<1x128xi32>
    %98 = arith.addi %96, %97 : vector<1x128xi32>
    %c8_i32_64 = arith.constant 8 : i32
    %99 = vector.broadcast %c8_i32_64 : i32 to vector<1x128xi32>
    %100 = arith.cmpi slt, %98, %99 : vector<1x128xi32>
    %cst_65 = arith.constant 0.000000e+00 : f32
    %101 = vector.shape_cast %100 : vector<1x128xi1> to vector<1x128xi1>
    %102 = vector.broadcast %101 : vector<1x128xi1> to vector<32x128xi1>
    %103 = vector.broadcast %cst_65 : f32 to vector<32x128xf32>
    %104 = arith.select %102, %95, %103 : vector<32x128xi1>, vector<32x128xf32>
    %c2_i32 = arith.constant 2 : i32
    %c0_i32_66 = arith.constant 0 : i32
    %c0_i32_67 = arith.constant 0 : i32
    %105 = tpu.memref_slice %arg1[%c2_i32, %c0_i32_66, %c0_i32_67] : memref<3x32x128xf32, #tpu.memory_space<vmem>> -> memref<1x32x128xf32, #tpu.memory_space<vmem>>
    %106 = tpu.memref_squeeze %105 : memref<1x32x128xf32, #tpu.memory_space<vmem>> -> memref<32x128xf32, #tpu.memory_space<vmem>>
    %c0_68 = arith.constant 0 : index
    %c0_69 = arith.constant 0 : index
    %107 = vector.load %106[%c0_68, %c0_69] : memref<32x128xf32, #tpu.memory_space<vmem>>, vector<32x128xf32>
    tpu.vector_store %106[%c0_68, %c0_69], %104 {strides = array<i32>} : memref<32x128xf32, #tpu.memory_space<vmem>>, vector<32x128xf32>,
    return
  }
}

</mosaic_0001>

<bundles_post_ra>
// kernel: tpu_custom_call.1
= control target key start
LH: loop header
LB: loop body
LE: loop exit
PB: predicated region body
PF: predicated region fallthrough
CT: control target
= control target key end

     0   :  { %6 = vsyncpa [#allocation4], 0  ;;  %s2109_s0 = inlined_call_operand.hbm [shape: f32[32,128], index: 0, kind: input, shape index: {}]   ;;  %s2110_s1 = inlined_call_operand.hbm [shape: f32[3,32,128], index: 1, kind: output, shape index: {}]  }
   0x1   :  { %7 = vsyncpa [#allocation5], 0  ;;  %s1931_s6 = smov [#allocation3]   ;;  %s1883_s10 = scalar_lea.hbm %s2109_s0, 512 }
   0x2   :  { %s13_s7 = sshll.u32 %s1931_s6, 4  ;;  %p1884_p0 = scmp.ne.s32.totalorder %s2109_s0, %s1883_s10  ;;  %s14_s7 = int_to_ptr.vmem [resolvable:$true] %s13_s7 }
   0x3   :  { %p1887_p1 = scmp.lt.u32.totalorder %s1883_s10, %s2109_s0 }
   0x5   :  { %p1889_p2 = pnand %p1887_p1, %p1884_p0 }
   0x7   :  { %1892 = shalt.err (!%p1889_p2)
}
   0x8   :  { %s1893_s15 = scalar_lea.vmem %s14_s7, 512  ;;  %p1898_p4 = scmp.lt.s32.totalorder %s14_s7, %s14_s7 }
   0x9   :  { %p1894_p3 = scmp.ne.s32.totalorder %s14_s7, %s1893_s15  ;;  %p1899_p5 = scmp.lt.s32.totalorder %s1893_s15, %s1893_s15 }
   0xb   :  { %p1900_p6 = por %p1899_p5, %p1898_p4 }
   0xd   :  { %p1901_p7 = pnand %p1900_p6, %p1894_p3 }
   0xf   :  { %1904 = shalt.err (!%p1901_p7)
}
  0x10   :  { %s1932_s16 = smov 128   ;;  %s1933_s17 = smov 8  }
  0x11   :  { %19 = dma.hbm_to_vmem [thread:$0]  %s2109_s0, 512, %s14_s7, [#allocation4], %s1932_s16, %s1932_s16, %s1933_s17  }
  0x12   :  { %1927 = dma.done.wait [#allocation4], 512  }
  0x13   :  { %1928 = vsyncadd [#allocation4], 4294966784  ;;  %v23_v0 = vld [vmem:[#allocation3] sm:$0xff]  ;;  %v24_v1 = vld [vmem:[#allocation3 + $0x8] sm:$0xff]  ;;  %vm75_vm0 = vcmask 261120   ;;  %s1934_s0 = smov [#allocation6]  }
  0x14   :  { %v27_v2 = vmul.f32 6.0, %v23_v0  ;;  %v25_v3 = vld [vmem:[#allocation3 + $0x10] sm:$0xff]  ;;  %v26_v4 = vld [vmem:[#allocation3 + $0x18] sm:$0xff]  ;;  %v1632_v5 = vpack.c.bf16 %v24_v1, %v23_v0  ;;  %v1960_v7 = vmul.f32 6.0, %v24_v1  ;;  %s1239_s20 = sshll.u32 %s1934_s0, 4  ;;  %s1240_s20 = int_to_ptr.vmem [resolvable:$true] %s1239_s20 }
  0x15   :  { %v1636_v6 = vpack.c.bf16 %v26_v4, %v25_v3  ;;  %v1963_v8 = vmul.f32 6.0, %v25_v3  ;;  %v1966_v9 = vmul.f32 6.0, %v26_v4  ;;  %s1905_s21 = scalar_lea.vmem %s1240_s20, 1536  ;;  %p1910_p9 = scmp.lt.s32.totalorder %s1240_s20, %s1240_s20 }
  0x16   :  { %43 = vxpose.xlu0.b32.start [1/4] (short) %v27_v2, 128  ;;  %1633 = vmatprep.subr.bf16.mxu0 %v1632_v5  ;;  %p1906_p8 = scmp.ne.s32.totalorder %s1240_s20, %s1905_s21  ;;  %p1911_p10 = scmp.lt.s32.totalorder %s1905_s21, %s1905_s21 }
  0x17   :  { %1635 = vmatpush3.bf16.msra.mxu0 %v1632_v5  ;;  %1486 = vmatprep.mubr.f32.mxu1 %v27_v2 }
  0x18   :  { %1637 = vmatprep.subr.bf16.mxu0 %v1636_v6  ;;  %p1912_p11 = por %p1911_p10, %p1910_p9 }
  0x1a   :  { %44 = vxpose.xlu0.b32.cont [2/4] (short) %v1960_v7, 128  ;;  %p1913_p12 = pnand %p1912_p11, %p1906_p8 }
  0x1b   :  { %1639 = vmatpush3.bf16.msra.mxu0 %v1636_v6 }
  0x1e   :  { %45 = vxpose.xlu0.b32.cont [3/4] (short) %v1963_v8, 128 }
  0x22   :  { %46 = vxpose.xlu0.b32.end [4/4] (short) %v1966_v9, 128 }
  0x96   :  { %v59_v10 = vpop.trf.xlu0 }
  0x97   :  { %1430 = vmatprep.mubr.msk.f32.mxu0 %vm75_vm0, %v59_v10 }
  0x9a   :  { %v60_v11 = vpop.trf.xlu0 }
  0x9b   :  { %1431 = vmatmul.mubr.msk.f32.vlgmr.msra.gmra.mrb[0].mxu0 %vm75_vm0, %v60_v11 }
  0x9e   :  { %v61_v12 = vpop.trf.xlu0 }
  0x9f   :  { %1433 = vmatprep.mubr.msk.f32.mxu0 %vm75_vm0, %v61_v12 }
  0xa2   :  { %v62_v13 = vpop.trf.xlu0 }
  0xa3   :  { %1434 = vmatmul.mubr.msk.f32.gmra.mrb[2].mxu0 %vm75_vm0, %v62_v13 }
  0xa6   :  { %v63_v14 = vpop.trf.xlu0 }
  0xa7   :  { %1436 = vmatprep.mubr.msk.f32.mxu0 %vm75_vm0, %v63_v14 }
  0xaa   :  { %v64_v15 = vpop.trf.xlu0 }
  0xab   :  { %1437 = vmatmul.mubr.msk.f32.gmra.mrb[4].mxu0 %vm75_vm0, %v64_v15 }
  0xae   :  { %v65_v16 = vpop.trf.xlu0 }
  0xaf   :  { %1439 = vmatprep.mubr.msk.f32.mxu0 %vm75_vm0, %v65_v16 }
  0xb2   :  { %v66_v17 = vpop.trf.xlu0 }
  0xb3   :  { %1440 = vmatmul.mubr.msk.f32.gmra.mrb[6].mxu0 %vm75_vm0, %v66_v17 }
  0xb6   :  { %v67_v18 = vpop.trf.xlu0 }
  0xb7   :  { %1442 = vmatprep.mubr.msk.f32.mxu0 %vm75_vm0, %v67_v18 }
  0xba   :  { %v68_v19 = vpop.trf.xlu0 }
  0xbb   :  { %1443 = vmatmul.mubr.msk.f32.gmra.mrb[8].mxu0 %vm75_vm0, %v68_v19 }
  0xbe   :  { %v69_v20 = vpop.trf.xlu0 }
  0xbf   :  { %1445 = vmatprep.mubr.msk.f32.mxu0 %vm75_vm0, %v69_v20 }
  0xc2   :  { %v70_v21 = vpop.trf.xlu0 }
  0xc3   :  { %1446 = vmatmul.mubr.msk.f32.gmra.mrb[10].mxu0 %vm75_vm0, %v70_v21 }
  0xc6   :  { %v71_v22 = vpop.trf.xlu0 }
  0xc7   :  { %1448 = vmatprep.mubr.msk.f32.mxu0 %vm75_vm0, %v71_v22 }
  0xca   :  { %v72_v23 = vpop.trf.xlu0 }
  0xcb   :  { %1449 = vmatmul.mubr.msk.f32.gmra.mrb[12].mxu0 %vm75_vm0, %v72_v23 }
  0xce   :  { %v73_v24 = vpop.trf.xlu0 }
  0xcf   :  { %1451 = vmatprep.mubr.msk.f32.mxu0 %vm75_vm0, %v73_v24 }
  0xd2   :  { %v74_v25 = vpop.trf.xlu0 }
  0xd3   :  { %1452 = vmatmul.mubr.msk.f32.gmra.mrb[14].mxu0 %vm75_vm0, %v74_v25 }
 0x16e   :  { %v1432_v26 = vpop.f32.mrb[0].mxu0 }
 0x16f   :  { %v271_v27 = vmul.f32 1.442695, %v1432_v26  ;;  %v190_v28 = vpop.f32.mrb[1].mxu0 }
 0x170   :  { %v269_v29 = vmul.f32 1.442695, %v190_v28 }
 0x171   :  { %1757 = vpow2.f32 %v271_v27 }
 0x172   :  { %1759 = vpow2.f32 %v269_v29 }
 0x176   :  { %v1435_v30 = vpop.f32.mrb[2].mxu0 }
 0x177   :  { %v275_v31 = vmul.f32 1.442695, %v1435_v30  ;;  %v200_v32 = vpop.f32.mrb[3].mxu0 }
 0x178   :  { %v273_v33 = vmul.f32 1.442695, %v200_v32 }
 0x179   :  { %1761 = vpow2.f32 %v275_v31 }
 0x17a   :  { %1763 = vpow2.f32 %v273_v33 }
 0x17b   :  { %v1758_v34 = vpop.eup %1757 }
 0x17c   :  { %v1760_v35 = vpop.eup %1759 }
 0x17d   :  { %v301_v36 = vadd.f32 %v1760_v35, %v1758_v34  ;;  %v1640_v37 = vpack.c.bf16 %v1758_v34, %v1760_v35 }
 0x17e   :  { %v1438_v38 = vpop.f32.mrb[4].mxu0 }
 0x17f   :  { %v279_v39 = vmul.f32 1.442695, %v1438_v38  ;;  %v210_v40 = vpop.f32.mrb[5].mxu0  ;;  %1641 = vmatprep.subr.bf16.mxu1 %v1640_v37 }
 0x180   :  { %v277_v41 = vmul.f32 1.442695, %v210_v40  ;;  %1643 = vmatpush3.bf16.msra.mxu1 %v1640_v37 }
 0x181   :  { %1765 = vpow2.f32 %v279_v39 }
 0x182   :  { %1767 = vpow2.f32 %v277_v41 }
 0x183   :  { %v1762_v42 = vpop.eup %1761 }
 0x184   :  { %v1764_v43 = vpop.eup %1763 }
 0x185   :  { %v302_v44 = vadd.f32 %v1764_v43, %v301_v36  ;;  %v1644_v45 = vpack.c.bf16 %v1762_v42, %v1764_v43 }
 0x186   :  { %v1441_v46 = vpop.f32.mrb[6].mxu0 }
 0x187   :  { %v303_v47 = vadd.f32 %v1762_v42, %v302_v44  ;;  %v283_v48 = vmul.f32 1.442695, %v1441_v46  ;;  %v220_v49 = vpop.f32.mrb[7].mxu0  ;;  %1645 = vmatprep.subr.bf16.mxu1 %v1644_v45  ;;  %v417_v46 = vlaneseq }
 0x188   :  { %v281_v50 = vmul.f32 1.442695, %v220_v49  ;;  %1647 = vmatpush3.bf16.msra.mxu1 %v1644_v45 }
 0x189   :  { %1769 = vpow2.f32 %v283_v48  ;;  %v1988_v48 = vand.u32 127, %v417_v46 }
 0x18a   :  { %1771 = vpow2.f32 %v281_v50 }
 0x18b   :  { %v1766_v51 = vpop.eup %1765  ;;  %vm419_vm1 = vcmp.lt.s32.totalorder %v1988_v48, 8 }
 0x18c   :  { %v1768_v52 = vpop.eup %1767  ;;  %vm2000_vm2 = vmpackc.low %vm419_vm1, %vm419_vm1 }
 0x18d   :  { %v304_v53 = vadd.f32 %v1768_v52, %v303_v47  ;;  %v1648_v54 = vpack.c.bf16 %v1766_v51, %v1768_v52 }
 0x18e   :  { %v1444_v55 = vpop.f32.mrb[8].mxu0 }
 0x18f   :  { %v305_v56 = vadd.f32 %v1766_v51, %v304_v53  ;;  %v287_v57 = vmul.f32 1.442695, %v1444_v55  ;;  %v230_v58 = vpop.f32.mrb[9].mxu0  ;;  %1649 = vmatprep.subr.bf16.mxu1 %v1648_v54 }
 0x190   :  { %v285_v59 = vmul.f32 1.442695, %v230_v58  ;;  %1651 = vmatpush3.bf16.msra.mxu1 %v1648_v54 }
 0x191   :  { %1773 = vpow2.f32 %v287_v57 }
 0x192   :  { %1775 = vpow2.f32 %v285_v59 }
 0x193   :  { %v1770_v60 = vpop.eup %1769 }
 0x194   :  { %v1772_v61 = vpop.eup %1771 }
 0x195   :  { %v306_v62 = vadd.f32 %v1772_v61, %v305_v56  ;;  %v1652_v63 = vpack.c.bf16 %v1770_v60, %v1772_v61 }
 0x196   :  { %v1447_v0 = vpop.f32.mrb[10].mxu0 }
 0x197   :  { %v307_v1 = vadd.f32 %v1770_v60, %v306_v62  ;;  %v291_v2 = vmul.f32 1.442695, %v1447_v0  ;;  %v240_v3 = vpop.f32.mrb[11].mxu0  ;;  %1653 = vmatprep.subr.bf16.mxu1 %v1652_v63 }
 0x198   :  { %v289_v4 = vmul.f32 1.442695, %v240_v3  ;;  %1655 = vmatpush3.bf16.msra.mxu1 %v1652_v63 }
 0x199   :  { %1777 = vpow2.f32 %v291_v2 }
 0x19a   :  { %1779 = vpow2.f32 %v289_v4 }
 0x19b   :  { %v1774_v5 = vpop.eup %1773 }
 0x19c   :  { %v1776_v6 = vpop.eup %1775 }
 0x19d   :  { %v308_v10 = vadd.f32 %v1776_v6, %v307_v1  ;;  %v1656_v11 = vpack.c.bf16 %v1774_v5, %v1776_v6 }
 0x19e   :  { %v1450_v12 = vpop.f32.mrb[12].mxu0 }
 0x19f   :  { %v309_v13 = vadd.f32 %v1774_v5, %v308_v10  ;;  %v295_v14 = vmul.f32 1.442695, %v1450_v12  ;;  %v250_v15 = vpop.f32.mrb[13].mxu0  ;;  %1657 = vmatprep.subr.bf16.mxu1 %v1656_v11 }
 0x1a0   :  { %v293_v16 = vmul.f32 1.442695, %v250_v15  ;;  %1659 = vmatpush3.bf16.msra.mxu1 %v1656_v11 }
 0x1a1   :  { %1781 = vpow2.f32 %v295_v14 }
 0x1a2   :  { %1783 = vpow2.f32 %v293_v16 }
 0x1a3   :  { %v1778_v17 = vpop.eup %1777 }
 0x1a4   :  { %v1780_v18 = vpop.eup %1779 }
 0x1a5   :  { %v310_v19 = vadd.f32 %v1780_v18, %v309_v13  ;;  %v1660_v20 = vpack.c.bf16 %v1778_v17, %v1780_v18 }
 0x1a6   :  { %v1453_v21 = vpop.f32.mrb[14].mxu0 }
 0x1a7   :  { %v311_v22 = vadd.f32 %v1778_v17, %v310_v19  ;;  %v299_v23 = vmul.f32 1.442695, %v1453_v21  ;;  %v260_v24 = vpop.f32.mrb[15].mxu0  ;;  %1661 = vmatprep.subr.bf16.mxu1 %v1660_v20 }
 0x1a8   :  { %v297_v25 = vmul.f32 1.442695, %v260_v24  ;;  %1663 = vmatpush3.bf16.msra.mxu1 %v1660_v20 }
 0x1a9   :  { %1785 = vpow2.f32 %v299_v23 }
 0x1aa   :  { %1787 = vpow2.f32 %v297_v25 }
 0x1ab   :  { %v1782_v26 = vpop.eup %1781 }
 0x1ac   :  { %v1784_v27 = vpop.eup %1783 }
 0x1ad   :  { %v312_v28 = vadd.f32 %v1784_v27, %v311_v22  ;;  %v1664_v29 = vpack.c.bf16 %v1782_v26, %v1784_v27 }
 0x1af   :  { %v313_v30 = vadd.f32 %v1782_v26, %v312_v28  ;;  %1665 = vmatprep.subr.bf16.mxu1 %v1664_v29 }
 0x1b0   :  { %1667 = vmatpush3.bf16.msra.mxu1 %v1664_v29 }
 0x1b3   :  { %v1786_v31 = vpop.eup %1785 }
 0x1b4   :  { %v1788_v32 = vpop.eup %1787 }
 0x1b5   :  { %v314_v33 = vadd.f32 %v1788_v32, %v313_v30  ;;  %v1668_v34 = vpack.c.bf16 %v1786_v31, %v1788_v32 }
 0x1b7   :  { %v315_v35 = vadd.f32 %v1786_v31, %v314_v33  ;;  %1669 = vmatprep.subr.bf16.mxu1 %v1668_v34 }
 0x1b8   :  { %1671 = vmatpush3.bf16.msra.mxu1 %v1668_v34 }
 0x1b9   :  { %v316_v36 = vrot.slane %v315_v35, 4 }
 0x1bb   :  { %1487 = vmatmul.mubr.f32.vlgmr.msra.gmra.mrb[0].mxu1 %v1960_v7  ;;  %v317_v37 = vadd.f32 %v316_v36, %v315_v35 }
 0x1bc   :  { %1489 = vmatprep.mubr.f32.mxu1 %v1963_v8 }
 0x1bd   :  { %v318_v38 = vrot.slane %v317_v37, 2 }
 0x1bf   :  { %1490 = vmatmul.mubr.f32.gmra.mrb[2].mxu1 %v1966_v9  ;;  %v319_v39 = vadd.f32 %v318_v38, %v317_v37 }
 0x1c1   :  { %v320_v40 = vrot.slane %v319_v39, 1 }
 0x1c3   :  { %v321_v41 = vadd.f32 %v320_v40, %v319_v39 }
 0x1c5   :  { %v1267_v42 = vadd.f32 -120.0, %v321_v41 }
 0x1c7   :  { %1789 = vrcp.f32 %v1267_v42 }
 0x1d1   :  { %v1790_v43 = vpop.eup %1789 }
 0x1d2   :  { %v324_v44 = vmul.f32 %v1790_v43, %v1267_v42 }
 0x1d4   :  { %v325_v45 = vsub.f32 2.0, %v324_v44 }
 0x1d6   :  { %v326_v47 = vmul.f32 %v1790_v43, %v325_v45 }
 0x1d8   :  { %v327_v7 = vmul.f32 0.16666667, %v326_v47 }
 0x28e   :  { %v1488_v49 = vpop.f32.mrb[0].mxu1 }
 0x28f   :  { %v414_v8 = vmul.f32 %v1488_v49, %v327_v7  ;;  %v394_v9 = vpop.f32.mrb[1].mxu1 }
 0x290   :  { %v413_v50 = vmul.f32 %v394_v9, %v327_v7 }
 0x291   :  { %v423_v51 = vsel %vm419_vm1, %v414_v8, 0.0 }
 0x292   :  { %427 = vst [vmem:[#allocation6 + $0x8] sm:$0xff] %v423_v51  ;;  %v422_v52 = vsel %vm419_vm1, %v413_v50, 0.0  ;;  %v1491_v53 = vpop.f32.mrb[2].mxu1  ;;  %v1860_v60 = vpack.c.bf16 %v414_v8, %v413_v50  ;;  %v2010_v62 = vmul.f32 6.0, %v423_v51 }
 0x293   :  { %426 = vst [vmem:[#allocation6] sm:$0xff] %v422_v52  ;;  %v416_v54 = vmul.f32 %v1491_v53, %v327_v7  ;;  %v404_v55 = vpop.f32.mrb[3].mxu1  ;;  %v434_v56 = vmul.f32 6.0, %v422_v52 }
 0x294   :  { %v415_v57 = vmul.f32 %v404_v55, %v327_v7  ;;  %1861 = vmatprep.subr.msk.bf16.mxu0 %vm2000_vm2, %v1860_v60 }
 0x295   :  { %v425_v58 = vsel %vm419_vm1, %v416_v54, 0.0  ;;  %450 = vxpose.xlu1.b32.start [1/4] (short) %v434_v56, 128  ;;  %1556 = vmatprep.mubr.f32.mxu1 %v434_v56 }
 0x296   :  { %429 = vst [vmem:[#allocation6 + $0x18] sm:$0xff] %v425_v58  ;;  %v424_v61 = vsel %vm419_vm1, %v415_v57, 0.0  ;;  %1864 = vmatpush3.bf16.msk.msra.mxu0 %vm2000_vm2, %v1860_v60  ;;  %v1866_v63 = vpack.c.bf16 %v416_v54, %v415_v57  ;;  %v2020_v1 = vmul.f32 6.0, %v425_v58 }
 0x297   :  { %428 = vst [vmem:[#allocation6 + $0x10] sm:$0xff] %v424_v61  ;;  %v2017_v0 = vmul.f32 6.0, %v424_v61 }
 0x298   :  { %1867 = vmatprep.subr.msk.bf16.mxu0 %vm2000_vm2, %v1866_v63 }
 0x299   :  { %451 = vxpose.xlu1.b32.cont [2/4] (short) %v2010_v62, 128 }
 0x29a   :  { %1870 = vmatpush3.bf16.msk.msra.mxu0 %vm2000_vm2, %v1866_v63 }
 0x29d   :  { %452 = vxpose.xlu1.b32.cont [3/4] (short) %v2017_v0, 128 }
 0x2a1   :  { %453 = vxpose.xlu1.b32.end [4/4] (short) %v2020_v1, 128 }
 0x315   :  { %v466_v2 = vpop.trf.xlu1 }
 0x316   :  { %1500 = vmatprep.mubr.msk.f32.mxu0 %vm75_vm0, %v466_v2 }
 0x319   :  { %v467_v3 = vpop.trf.xlu1 }
 0x31a   :  { %1501 = vmatmul.mubr.msk.f32.vlgmr.msra.gmra.mrb[16].mxu0 %vm75_vm0, %v467_v3 }
 0x31d   :  { %v468_v4 = vpop.trf.xlu1 }
 0x31e   :  { %1503 = vmatprep.mubr.msk.f32.mxu0 %vm75_vm0, %v468_v4 }
 0x321   :  { %v469_v5 = vpop.trf.xlu1 }
 0x322   :  { %1504 = vmatmul.mubr.msk.f32.gmra.mrb[18].mxu0 %vm75_vm0, %v469_v5 }
 0x325   :  { %v470_v6 = vpop.trf.xlu1 }
 0x326   :  { %1506 = vmatprep.mubr.msk.f32.mxu0 %vm75_vm0, %v470_v6 }
 0x329   :  { %v471_v10 = vpop.trf.xlu1 }
 0x32a   :  { %1507 = vmatmul.mubr.msk.f32.gmra.mrb[20].mxu0 %vm75_vm0, %v471_v10 }
 0x32d   :  { %v472_v11 = vpop.trf.xlu1 }
 0x32e   :  { %1509 = vmatprep.mubr.msk.f32.mxu0 %vm75_vm0, %v472_v11 }
 0x331   :  { %v473_v12 = vpop.trf.xlu1 }
 0x332   :  { %1510 = vmatmul.mubr.msk.f32.gmra.mrb[22].mxu0 %vm75_vm0, %v473_v12 }
 0x335   :  { %v474_v13 = vpop.trf.xlu1 }
 0x336   :  { %1512 = vmatprep.mubr.msk.f32.mxu0 %vm75_vm0, %v474_v13 }
 0x339   :  { %v475_v14 = vpop.trf.xlu1 }
 0x33a   :  { %1513 = vmatmul.mubr.msk.f32.gmra.mrb[24].mxu0 %vm75_vm0, %v475_v14 }
 0x33d   :  { %v476_v15 = vpop.trf.xlu1 }
 0x33e   :  { %1515 = vmatprep.mubr.msk.f32.mxu0 %vm75_vm0, %v476_v15 }
 0x341   :  { %v477_v16 = vpop.trf.xlu1 }
 0x342   :  { %1516 = vmatmul.mubr.msk.f32.gmra.mrb[26].mxu0 %vm75_vm0, %v477_v16 }
 0x345   :  { %v478_v17 = vpop.trf.xlu1 }
 0x346   :  { %1518 = vmatprep.mubr.msk.f32.mxu0 %vm75_vm0, %v478_v17 }
 0x349   :  { %v479_v18 = vpop.trf.xlu1 }
 0x34a   :  { %1519 = vmatmul.mubr.msk.f32.gmra.mrb[28].mxu0 %vm75_vm0, %v479_v18 }
 0x34d   :  { %v480_v19 = vpop.trf.xlu1 }
 0x34e   :  { %1521 = vmatprep.mubr.msk.f32.mxu0 %vm75_vm0, %v480_v19 }
 0x351   :  { %v481_v20 = vpop.trf.xlu1 }
 0x352   :  { %1522 = vmatmul.mubr.msk.f32.gmra.mrb[30].mxu0 %vm75_vm0, %v481_v20 }
 0x3ed   :  { %v1502_v21 = vpop.f32.mrb[16].mxu0 }
 0x3ee   :  { %v677_v22 = vmul.f32 1.442695, %v1502_v21  ;;  %v596_v23 = vpop.f32.mrb[17].mxu0 }
 0x3ef   :  { %v675_v24 = vmul.f32 1.442695, %v596_v23 }
 0x3f0   :  { %1791 = vpow2.f32 %v677_v22 }
 0x3f1   :  { %1793 = vpow2.f32 %v675_v24 }
 0x3f5   :  { %v1505_v25 = vpop.f32.mrb[18].mxu0 }
 0x3f6   :  { %v681_v26 = vmul.f32 1.442695, %v1505_v25  ;;  %v606_v27 = vpop.f32.mrb[19].mxu0 }
 0x3f7   :  { %v679_v28 = vmul.f32 1.442695, %v606_v27 }
 0x3f8   :  { %1795 = vpow2.f32 %v681_v26 }
 0x3f9   :  { %1797 = vpow2.f32 %v679_v28 }
 0x3fa   :  { %v1792_v29 = vpop.eup %1791 }
 0x3fb   :  { %v1794_v30 = vpop.eup %1793 }
 0x3fc   :  { %v707_v31 = vadd.f32 %v1794_v30, %v1792_v29  ;;  %v1680_v32 = vpack.c.bf16 %v1792_v29, %v1794_v30 }
 0x3fd   :  { %v1508_v33 = vpop.f32.mrb[20].mxu0 }
 0x3fe   :  { %v685_v34 = vmul.f32 1.442695, %v1508_v33  ;;  %v616_v35 = vpop.f32.mrb[21].mxu0  ;;  %1681 = vmatprep.subr.bf16.mxu1 %v1680_v32 }
 0x3ff   :  { %v683_v36 = vmul.f32 1.442695, %v616_v35  ;;  %1683 = vmatpush3.bf16.msra.mxu1 %v1680_v32 }
 0x400   :  { %1799 = vpow2.f32 %v685_v34 }
 0x401   :  { %1801 = vpow2.f32 %v683_v36 }
 0x402   :  { %v1796_v37 = vpop.eup %1795 }
 0x403   :  { %v1798_v38 = vpop.eup %1797 }
 0x404   :  { %v708_v39 = vadd.f32 %v1798_v38, %v707_v31  ;;  %v1684_v40 = vpack.c.bf16 %v1796_v37, %v1798_v38 }
 0x405   :  { %v1511_v41 = vpop.f32.mrb[22].mxu0 }
 0x406   :  { %v709_v42 = vadd.f32 %v1796_v37, %v708_v39  ;;  %v689_v43 = vmul.f32 1.442695, %v1511_v41  ;;  %v626_v44 = vpop.f32.mrb[23].mxu0  ;;  %1685 = vmatprep.subr.bf16.mxu1 %v1684_v40 }
 0x407   :  { %v687_v45 = vmul.f32 1.442695, %v626_v44  ;;  %1687 = vmatpush3.bf16.msra.mxu1 %v1684_v40 }
 0x408   :  { %1803 = vpow2.f32 %v689_v43 }
 0x409   :  { %1805 = vpow2.f32 %v687_v45 }
 0x40a   :  { %v1800_v46 = vpop.eup %1799 }
 0x40b   :  { %v1802_v47 = vpop.eup %1801 }
 0x40c   :  { %v710_v7 = vadd.f32 %v1802_v47, %v709_v42  ;;  %v1688_v49 = vpack.c.bf16 %v1800_v46, %v1802_v47 }
 0x40d   :  { %v1514_v8 = vpop.f32.mrb[24].mxu0 }
 0x40e   :  { %v711_v9 = vadd.f32 %v1800_v46, %v710_v7  ;;  %v693_v50 = vmul.f32 1.442695, %v1514_v8  ;;  %v636_v51 = vpop.f32.mrb[25].mxu0  ;;  %1689 = vmatprep.subr.bf16.mxu1 %v1688_v49 }
 0x40f   :  { %v691_v52 = vmul.f32 1.442695, %v636_v51  ;;  %1691 = vmatpush3.bf16.msra.mxu1 %v1688_v49 }
 0x410   :  { %1807 = vpow2.f32 %v693_v50 }
 0x411   :  { %1809 = vpow2.f32 %v691_v52 }
 0x412   :  { %v1804_v53 = vpop.eup %1803 }
 0x413   :  { %v1806_v54 = vpop.eup %1805 }
 0x414   :  { %v712_v55 = vadd.f32 %v1806_v54, %v711_v9  ;;  %v1692_v56 = vpack.c.bf16 %v1804_v53, %v1806_v54 }
 0x415   :  { %v1517_v57 = vpop.f32.mrb[26].mxu0 }
 0x416   :  { %v713_v58 = vadd.f32 %v1804_v53, %v712_v55  ;;  %v697_v60 = vmul.f32 1.442695, %v1517_v57  ;;  %v646_v61 = vpop.f32.mrb[27].mxu0  ;;  %1693 = vmatprep.subr.bf16.mxu1 %v1692_v56 }
 0x417   :  { %v695_v63 = vmul.f32 1.442695, %v646_v61  ;;  %1695 = vmatpush3.bf16.msra.mxu1 %v1692_v56 }
 0x418   :  { %1811 = vpow2.f32 %v697_v60 }
 0x419   :  { %1813 = vpow2.f32 %v695_v63 }
 0x41a   :  { %v1808_v2 = vpop.eup %1807 }
 0x41b   :  { %v1810_v3 = vpop.eup %1809 }
 0x41c   :  { %v714_v4 = vadd.f32 %v1810_v3, %v713_v58  ;;  %v1696_v5 = vpack.c.bf16 %v1808_v2, %v1810_v3 }
 0x41d   :  { %v1520_v6 = vpop.f32.mrb[28].mxu0 }
 0x41e   :  { %v715_v10 = vadd.f32 %v1808_v2, %v714_v4  ;;  %v701_v11 = vmul.f32 1.442695, %v1520_v6  ;;  %v656_v12 = vpop.f32.mrb[29].mxu0  ;;  %1697 = vmatprep.subr.bf16.mxu1 %v1696_v5 }
 0x41f   :  { %v699_v13 = vmul.f32 1.442695, %v656_v12  ;;  %1699 = vmatpush3.bf16.msra.mxu1 %v1696_v5 }
 0x420   :  { %1815 = vpow2.f32 %v701_v11 }
 0x421   :  { %1817 = vpow2.f32 %v699_v13 }
 0x422   :  { %v1812_v14 = vpop.eup %1811 }
 0x423   :  { %v1814_v15 = vpop.eup %1813 }
 0x424   :  { %v716_v16 = vadd.f32 %v1814_v15, %v715_v10  ;;  %v1700_v17 = vpack.c.bf16 %v1812_v14, %v1814_v15 }
 0x425   :  { %v1523_v18 = vpop.f32.mrb[30].mxu0 }
 0x426   :  { %v717_v19 = vadd.f32 %v1812_v14, %v716_v16  ;;  %v705_v20 = vmul.f32 1.442695, %v1523_v18  ;;  %v666_v21 = vpop.f32.mrb[31].mxu0  ;;  %1701 = vmatprep.subr.bf16.mxu1 %v1700_v17 }
 0x427   :  { %v703_v22 = vmul.f32 1.442695, %v666_v21  ;;  %1703 = vmatpush3.bf16.msra.mxu1 %v1700_v17 }
 0x428   :  { %1819 = vpow2.f32 %v705_v20 }
 0x429   :  { %1821 = vpow2.f32 %v703_v22 }
 0x42a   :  { %v1816_v23 = vpop.eup %1815 }
 0x42b   :  { %v1818_v24 = vpop.eup %1817 }
 0x42c   :  { %v718_v25 = vadd.f32 %v1818_v24, %v717_v19  ;;  %v1704_v26 = vpack.c.bf16 %v1816_v23, %v1818_v24 }
 0x42e   :  { %v719_v27 = vadd.f32 %v1816_v23, %v718_v25  ;;  %1705 = vmatprep.subr.bf16.mxu1 %v1704_v26 }
 0x42f   :  { %1707 = vmatpush3.bf16.msra.mxu1 %v1704_v26 }
 0x432   :  { %v1820_v28 = vpop.eup %1819 }
 0x433   :  { %v1822_v29 = vpop.eup %1821 }
 0x434   :  { %v720_v30 = vadd.f32 %v1822_v29, %v719_v27  ;;  %v1708_v31 = vpack.c.bf16 %v1820_v28, %v1822_v29 }
 0x436   :  { %v721_v32 = vadd.f32 %v1820_v28, %v720_v30  ;;  %1709 = vmatprep.subr.bf16.mxu1 %v1708_v31 }
 0x437   :  { %1711 = vmatpush3.bf16.msra.mxu1 %v1708_v31 }
 0x438   :  { %v722_v33 = vrot.slane %v721_v32, 4 }
 0x43a   :  { %1557 = vmatmul.mubr.f32.vlgmr.msra.gmra.mrb[4].mxu1 %v2010_v62  ;;  %v723_v34 = vadd.f32 %v722_v33, %v721_v32 }
 0x43b   :  { %1559 = vmatprep.mubr.f32.mxu1 %v2017_v0 }
 0x43c   :  { %v724_v35 = vrot.slane %v723_v34, 2 }
 0x43e   :  { %1560 = vmatmul.mubr.f32.gmra.mrb[6].mxu1 %v2020_v1  ;;  %v725_v36 = vadd.f32 %v724_v35, %v723_v34 }
 0x440   :  { %v726_v37 = vrot.slane %v725_v36, 1 }
 0x442   :  { %v727_v38 = vadd.f32 %v726_v37, %v725_v36 }
 0x444   :  { %v1284_v39 = vadd.f32 -120.0, %v727_v38 }
 0x446   :  { %1823 = vrcp.f32 %v1284_v39 }
 0x450   :  { %v1824_v40 = vpop.eup %1823 }
 0x451   :  { %v730_v41 = vmul.f32 %v1824_v40, %v1284_v39 }
 0x453   :  { %v731_v42 = vsub.f32 2.0, %v730_v41 }
 0x455   :  { %v732_v43 = vmul.f32 %v1824_v40, %v731_v42 }
 0x457   :  { %v733_v44 = vmul.f32 0.16666667, %v732_v43 }
 0x50d   :  { %v1558_v45 = vpop.f32.mrb[4].mxu1 }
 0x50e   :  { %v820_v46 = vmul.f32 %v1558_v45, %v733_v44  ;;  %v800_v62 = vpop.f32.mrb[5].mxu1 }
 0x50f   :  { %v819_v47 = vmul.f32 %v800_v62, %v733_v44 }
 0x510   :  { %v824_v0 = vsel %vm419_vm1, %v820_v46, 0.0 }
 0x511   :  { %829 = vst [vmem:[#allocation6 + $0x28] sm:$0xff] %v824_v0  ;;  %v823_v1 = vsel %vm419_vm1, %v819_v47, 0.0  ;;  %v1561_v7 = vpop.f32.mrb[6].mxu1  ;;  %v1872_v52 = vpack.c.bf16 %v820_v46, %v819_v47  ;;  %v2054_v54 = vmul.f32 6.0, %v824_v0 }
 0x512   :  { %828 = vst [vmem:[#allocation6 + $0x20] sm:$0xff] %v823_v1  ;;  %v822_v49 = vmul.f32 %v1561_v7, %v733_v44  ;;  %v810_v8 = vpop.f32.mrb[7].mxu1  ;;  %v836_v9 = vmul.f32 6.0, %v823_v1 }
 0x513   :  { %v821_v50 = vmul.f32 %v810_v8, %v733_v44  ;;  %1873 = vmatprep.subr.msk.bf16.mxu0 %vm2000_vm2, %v1872_v52 }
 0x514   :  { %v826_v51 = vsel %vm419_vm1, %v822_v49, 0.0  ;;  %852 = vxpose.xlu0.b32.start [1/4] (short) %v836_v9, 128  ;;  %1626 = vmatprep.mubr.f32.mxu1 %v836_v9 }
 0x515   :  { %831 = vst [vmem:[#allocation6 + $0x38] sm:$0xff] %v826_v51  ;;  %v825_v53 = vsel %vm419_vm1, %v821_v50, 0.0  ;;  %1876 = vmatpush3.bf16.msk.msra.mxu0 %vm2000_vm2, %v1872_v52  ;;  %v1878_v55 = vpack.c.bf16 %v822_v49, %v821_v50  ;;  %v2064_v57 = vmul.f32 6.0, %v826_v51 }
 0x516   :  { %830 = vst [vmem:[#allocation6 + $0x30] sm:$0xff] %v825_v53  ;;  %v2061_v56 = vmul.f32 6.0, %v825_v53 }
 0x517   :  { %1879 = vmatprep.subr.msk.bf16.mxu0 %vm2000_vm2, %v1878_v55 }
 0x518   :  { %853 = vxpose.xlu0.b32.cont [2/4] (short) %v2054_v54, 128 }
 0x519   :  { %1882 = vmatpush3.bf16.msk.msra.mxu0 %vm2000_vm2, %v1878_v55 }
 0x51c   :  { %854 = vxpose.xlu0.b32.cont [3/4] (short) %v2061_v56, 128 }
 0x520   :  { %855 = vxpose.xlu0.b32.end [4/4] (short) %v2064_v57, 128 }
 0x594   :  { %v868_v58 = vpop.trf.xlu0 }
 0x595   :  { %1570 = vmatprep.mubr.msk.f32.mxu0 %vm75_vm0, %v868_v58 }
 0x598   :  { %v869_v60 = vpop.trf.xlu0 }
 0x599   :  { %1571 = vmatmul.mubr.msk.f32.vlgmr.msra.gmra.mrb[32].mxu0 %vm75_vm0, %v869_v60 }
 0x59c   :  { %v870_v61 = vpop.trf.xlu0 }
 0x59d   :  { %1573 = vmatprep.mubr.msk.f32.mxu0 %vm75_vm0, %v870_v61 }
 0x5a0   :  { %v871_v63 = vpop.trf.xlu0 }
 0x5a1   :  { %1574 = vmatmul.mubr.msk.f32.gmra.mrb[34].mxu0 %vm75_vm0, %v871_v63 }
 0x5a4   :  { %v872_v59 = vpop.trf.xlu0 }
 0x5a5   :  { %1576 = vmatprep.mubr.msk.f32.mxu0 %vm75_vm0, %v872_v59 }
 0x5a8   :  { %v873_v2 = vpop.trf.xlu0 }
 0x5a9   :  { %1577 = vmatmul.mubr.msk.f32.gmra.mrb[36].mxu0 %vm75_vm0, %v873_v2 }
 0x5ac   :  { %v874_v3 = vpop.trf.xlu0 }
 0x5ad   :  { %1579 = vmatprep.mubr.msk.f32.mxu0 %vm75_vm0, %v874_v3 }
 0x5b0   :  { %v875_v4 = vpop.trf.xlu0 }
 0x5b1   :  { %1580 = vmatmul.mubr.msk.f32.gmra.mrb[38].mxu0 %vm75_vm0, %v875_v4 }
 0x5b4   :  { %v876_v5 = vpop.trf.xlu0 }
 0x5b5   :  { %1582 = vmatprep.mubr.msk.f32.mxu0 %vm75_vm0, %v876_v5 }
 0x5b8   :  { %v877_v6 = vpop.trf.xlu0 }
 0x5b9   :  { %1583 = vmatmul.mubr.msk.f32.gmra.mrb[40].mxu0 %vm75_vm0, %v877_v6 }
 0x5bc   :  { %v878_v10 = vpop.trf.xlu0 }
 0x5bd   :  { %1585 = vmatprep.mubr.msk.f32.mxu0 %vm75_vm0, %v878_v10 }
 0x5c0   :  { %v879_v11 = vpop.trf.xlu0 }
 0x5c1   :  { %1586 = vmatmul.mubr.msk.f32.gmra.mrb[42].mxu0 %vm75_vm0, %v879_v11 }
 0x5c4   :  { %v880_v12 = vpop.trf.xlu0 }
 0x5c5   :  { %1588 = vmatprep.mubr.msk.f32.mxu0 %vm75_vm0, %v880_v12 }
 0x5c8   :  { %v881_v13 = vpop.trf.xlu0 }
 0x5c9   :  { %1589 = vmatmul.mubr.msk.f32.gmra.mrb[44].mxu0 %vm75_vm0, %v881_v13 }
 0x5cc   :  { %v882_v14 = vpop.trf.xlu0 }
 0x5cd   :  { %1591 = vmatprep.mubr.msk.f32.mxu0 %vm75_vm0, %v882_v14 }
 0x5d0   :  { %v883_v15 = vpop.trf.xlu0 }
 0x5d1   :  { %1592 = vmatmul.mubr.msk.f32.gmra.mrb[46].mxu0 %vm75_vm0, %v883_v15 }
 0x66c   :  { %v1572_v16 = vpop.f32.mrb[32].mxu0 }
 0x66d   :  { %v1079_v17 = vmul.f32 1.442695, %v1572_v16  ;;  %v998_v18 = vpop.f32.mrb[33].mxu0 }
 0x66e   :  { %v1077_v19 = vmul.f32 1.442695, %v998_v18 }
 0x66f   :  { %1825 = vpow2.f32 %v1079_v17 }
 0x670   :  { %1827 = vpow2.f32 %v1077_v19 }
 0x674   :  { %v1575_v20 = vpop.f32.mrb[34].mxu0 }
 0x675   :  { %v1083_v21 = vmul.f32 1.442695, %v1575_v20  ;;  %v1008_v22 = vpop.f32.mrb[35].mxu0 }
 0x676   :  { %v1081_v23 = vmul.f32 1.442695, %v1008_v22 }
 0x677   :  { %1829 = vpow2.f32 %v1083_v21 }
 0x678   :  { %1831 = vpow2.f32 %v1081_v23 }
 0x679   :  { %v1826_v24 = vpop.eup %1825 }
 0x67a   :  { %v1828_v25 = vpop.eup %1827 }
 0x67b   :  { %v1109_v26 = vadd.f32 %v1828_v25, %v1826_v24  ;;  %v1720_v27 = vpack.c.bf16 %v1826_v24, %v1828_v25 }
 0x67c   :  { %v1578_v28 = vpop.f32.mrb[36].mxu0 }
 0x67d   :  { %v1087_v29 = vmul.f32 1.442695, %v1578_v28  ;;  %v1018_v30 = vpop.f32.mrb[37].mxu0  ;;  %1721 = vmatprep.subr.bf16.mxu1 %v1720_v27 }
 0x67e   :  { %v1085_v31 = vmul.f32 1.442695, %v1018_v30  ;;  %1723 = vmatpush3.bf16.msra.mxu1 %v1720_v27 }
 0x67f   :  { %1833 = vpow2.f32 %v1087_v29 }
 0x680   :  { %1835 = vpow2.f32 %v1085_v31 }
 0x681   :  { %v1830_v32 = vpop.eup %1829 }
 0x682   :  { %v1832_v33 = vpop.eup %1831 }
 0x683   :  { %v1110_v34 = vadd.f32 %v1832_v33, %v1109_v26  ;;  %v1724_v35 = vpack.c.bf16 %v1830_v32, %v1832_v33 }
 0x684   :  { %v1581_v36 = vpop.f32.mrb[38].mxu0 }
 0x685   :  { %v1111_v37 = vadd.f32 %v1830_v32, %v1110_v34  ;;  %v1091_v38 = vmul.f32 1.442695, %v1581_v36  ;;  %v1028_v39 = vpop.f32.mrb[39].mxu0  ;;  %1725 = vmatprep.subr.bf16.mxu1 %v1724_v35 }
 0x686   :  { %v1089_v40 = vmul.f32 1.442695, %v1028_v39  ;;  %1727 = vmatpush3.bf16.msra.mxu1 %v1724_v35 }
 0x687   :  { %1837 = vpow2.f32 %v1091_v38 }
 0x688   :  { %1839 = vpow2.f32 %v1089_v40 }
 0x689   :  { %v1834_v41 = vpop.eup %1833 }
 0x68a   :  { %v1836_v42 = vpop.eup %1835 }
 0x68b   :  { %v1112_v43 = vadd.f32 %v1836_v42, %v1111_v37  ;;  %v1728_v44 = vpack.c.bf16 %v1834_v41, %v1836_v42 }
 0x68c   :  { %v1584_v45 = vpop.f32.mrb[40].mxu0 }
 0x68d   :  { %v1113_v46 = vadd.f32 %v1834_v41, %v1112_v43  ;;  %v1095_v62 = vmul.f32 1.442695, %v1584_v45  ;;  %v1038_v47 = vpop.f32.mrb[41].mxu0  ;;  %1729 = vmatprep.subr.bf16.mxu1 %v1728_v44 }
 0x68e   :  { %v1093_v0 = vmul.f32 1.442695, %v1038_v47  ;;  %1731 = vmatpush3.bf16.msra.mxu1 %v1728_v44 }
 0x68f   :  { %1841 = vpow2.f32 %v1095_v62 }
 0x690   :  { %1843 = vpow2.f32 %v1093_v0 }
 0x691   :  { %v1838_v1 = vpop.eup %1837 }
 0x692   :  { %v1840_v7 = vpop.eup %1839 }
 0x693   :  { %v1114_v49 = vadd.f32 %v1840_v7, %v1113_v46  ;;  %v1732_v8 = vpack.c.bf16 %v1838_v1, %v1840_v7 }
 0x694   :  { %v1587_v9 = vpop.f32.mrb[42].mxu0 }
 0x695   :  { %v1115_v50 = vadd.f32 %v1838_v1, %v1114_v49  ;;  %v1099_v51 = vmul.f32 1.442695, %v1587_v9  ;;  %v1048_v52 = vpop.f32.mrb[43].mxu0  ;;  %1733 = vmatprep.subr.bf16.mxu1 %v1732_v8 }
 0x696   :  { %v1097_v53 = vmul.f32 1.442695, %v1048_v52  ;;  %1735 = vmatpush3.bf16.msra.mxu1 %v1732_v8 }
 0x697   :  { %1845 = vpow2.f32 %v1099_v51 }
 0x698   :  { %1847 = vpow2.f32 %v1097_v53 }
 0x699   :  { %v1842_v55 = vpop.eup %1841 }
 0x69a   :  { %v1844_v58 = vpop.eup %1843 }
 0x69b   :  { %v1116_v60 = vadd.f32 %v1844_v58, %v1115_v50  ;;  %v1736_v61 = vpack.c.bf16 %v1842_v55, %v1844_v58 }
 0x69c   :  { %v1590_v63 = vpop.f32.mrb[44].mxu0 }
 0x69d   :  { %v1117_v59 = vadd.f32 %v1842_v55, %v1116_v60  ;;  %v1103_v2 = vmul.f32 1.442695, %v1590_v63  ;;  %v1058_v3 = vpop.f32.mrb[45].mxu0  ;;  %1737 = vmatprep.subr.bf16.mxu1 %v1736_v61 }
 0x69e   :  { %v1101_v4 = vmul.f32 1.442695, %v1058_v3  ;;  %1739 = vmatpush3.bf16.msra.mxu1 %v1736_v61 }
 0x69f   :  { %1849 = vpow2.f32 %v1103_v2 }
 0x6a0   :  { %1851 = vpow2.f32 %v1101_v4 }
 0x6a1   :  { %v1846_v5 = vpop.eup %1845 }
 0x6a2   :  { %v1848_v6 = vpop.eup %1847 }
 0x6a3   :  { %v1118_v10 = vadd.f32 %v1848_v6, %v1117_v59  ;;  %v1740_v11 = vpack.c.bf16 %v1846_v5, %v1848_v6 }
 0x6a4   :  { %v1593_v12 = vpop.f32.mrb[46].mxu0 }
 0x6a5   :  { %v1119_v13 = vadd.f32 %v1846_v5, %v1118_v10  ;;  %v1107_v14 = vmul.f32 1.442695, %v1593_v12  ;;  %v1068_v15 = vpop.f32.mrb[47].mxu0  ;;  %1741 = vmatprep.subr.bf16.mxu1 %v1740_v11 }
 0x6a6   :  { %v1105_v16 = vmul.f32 1.442695, %v1068_v15  ;;  %1743 = vmatpush3.bf16.msra.mxu1 %v1740_v11 }
 0x6a7   :  { %1853 = vpow2.f32 %v1107_v14 }
 0x6a8   :  { %1855 = vpow2.f32 %v1105_v16 }
 0x6a9   :  { %v1850_v17 = vpop.eup %1849 }
 0x6aa   :  { %v1852_v18 = vpop.eup %1851 }
 0x6ab   :  { %v1120_v19 = vadd.f32 %v1852_v18, %v1119_v13  ;;  %v1744_v20 = vpack.c.bf16 %v1850_v17, %v1852_v18 }
 0x6ad   :  { %v1121_v21 = vadd.f32 %v1850_v17, %v1120_v19  ;;  %1745 = vmatprep.subr.bf16.mxu1 %v1744_v20 }
 0x6ae   :  { %1747 = vmatpush3.bf16.msra.mxu1 %v1744_v20 }
 0x6b1   :  { %v1854_v22 = vpop.eup %1853 }
 0x6b2   :  { %v1856_v23 = vpop.eup %1855 }
 0x6b3   :  { %v1122_v24 = vadd.f32 %v1856_v23, %v1121_v21  ;;  %v1748_v25 = vpack.c.bf16 %v1854_v22, %v1856_v23 }
 0x6b5   :  { %v1123_v26 = vadd.f32 %v1854_v22, %v1122_v24  ;;  %1749 = vmatprep.subr.bf16.mxu1 %v1748_v25 }
 0x6b6   :  { %1751 = vmatpush3.bf16.msra.mxu1 %v1748_v25 }
 0x6b7   :  { %v1124_v27 = vrot.slane %v1123_v26, 4 }
 0x6b9   :  { %1627 = vmatmul.mubr.f32.vlgmr.msra.gmra.mrb[8].mxu1 %v2054_v54  ;;  %v1125_v28 = vadd.f32 %v1124_v27, %v1123_v26 }
 0x6ba   :  { %1629 = vmatprep.mubr.f32.mxu1 %v2061_v56 }
 0x6bb   :  { %v1126_v29 = vrot.slane %v1125_v28, 2 }
 0x6bd   :  { %1630 = vmatmul.mubr.f32.gmra.mrb[10].mxu1 %v2064_v57  ;;  %v1127_v30 = vadd.f32 %v1126_v29, %v1125_v28 }
 0x6bf   :  { %v1128_v31 = vrot.slane %v1127_v30, 1 }
 0x6c1   :  { %v1129_v32 = vadd.f32 %v1128_v31, %v1127_v30 }
 0x6c3   :  { %v1301_v33 = vadd.f32 -120.0, %v1129_v32 }
 0x6c5   :  { %1857 = vrcp.f32 %v1301_v33 }
 0x6cf   :  { %v1858_v34 = vpop.eup %1857 }
 0x6d0   :  { %v1132_v35 = vmul.f32 %v1858_v34, %v1301_v33 }
 0x6d2   :  { %v1133_v36 = vsub.f32 2.0, %v1132_v35 }
 0x6d4   :  { %v1134_v37 = vmul.f32 %v1858_v34, %v1133_v36 }
 0x6d6   :  { %v1135_v38 = vmul.f32 0.16666667, %v1134_v37 }
 0x78c   :  { %v1628_v39 = vpop.f32.mrb[8].mxu1 }
 0x78d   :  { %v1222_v40 = vmul.f32 %v1628_v39, %v1135_v38  ;;  %v1202_v54 = vpop.f32.mrb[9].mxu1 }
 0x78e   :  { %v1221_v41 = vmul.f32 %v1202_v54, %v1135_v38 }
 0x78f   :  { %v1226_v56 = vsel %vm419_vm1, %v1222_v40, 0.0 }
 0x790   :  { %1231 = vst [vmem:[#allocation6 + $0x48] sm:$0xff] %v1226_v56  ;;  %v1225_v57 = vsel %vm419_vm1, %v1221_v41, 0.0  ;;  %v1631_v42 = vpop.f32.mrb[10].mxu1 }
 0x791   :  { %1230 = vst [vmem:[#allocation6 + $0x40] sm:$0xff] %v1225_v57  ;;  %v1224_v43 = vmul.f32 %v1631_v42, %v1135_v38  ;;  %v1212_v44 = vpop.f32.mrb[11].mxu1 }
 0x792   :  { %v1223_v45 = vmul.f32 %v1212_v44, %v1135_v38 }
 0x793   :  { %v1228_v46 = vsel %vm419_vm1, %v1224_v43, 0.0 }
 0x794   :  { %1233 = vst [vmem:[#allocation6 + $0x58] sm:$0xff] %v1228_v46  ;;  %v1227_v62 = vsel %vm419_vm1, %v1223_v45, 0.0 }
 0x795   :  { %1232 = vst [vmem:[#allocation6 + $0x50] sm:$0xff] %v1227_v62 }
 0x796   :  { %1916 = shalt.err (!%p1913_p12)
}
 0x797   :  { %s1917_s24 = scalar_lea.hbm %s2110_s1, 1536 }
 0x798   :  { %p1918_p13 = scmp.ne.s32.totalorder %s2110_s1, %s1917_s24  ;;  %p1921_p0 = scmp.lt.u32.totalorder %s1917_s24, %s2110_s1 }
 0x79a   :  { %p1923_p1 = pnand %p1921_p0, %p1918_p13 }
 0x79c   :  { %1926 = shalt.err (!%p1923_p1)
}
 0x79d   :  { %1245 = dma.vmem_to_hbm [thread:$0]  %s1240_s20, 1536, %s2110_s1, [#allocation5], %s1932_s16, %s1932_s16, %s1933_s17  }
 0x79e   :  { %1929 = dma.done.wait [#allocation5], 1536  }
 0x79f   :  { %1930 = vsyncadd [#allocation5], 4294965760 }
 0x7a0   :  { %1249 = vsyncpa [#allocation4], 1 }
 0x7a1   :  { %1250 = vsyncpa [#allocation5], 1 }

</bundles_post_ra>
